<compile_context>
chip_gen: v5e
topology: v5e:2x2
jax: 0.10.0
libtpu: 0.0.40
codegen_flags: <defaults>
</compile_context>

<pallas_src>
import jax
import jax.numpy as jnp
from jax import lax
from jax.experimental import pallas as pl
from jax.experimental.pallas import tpu as pltpu

_LANES = 128        # TPU lane width; batch tiles are multiples of this.
_MAX_BLOCK_B = 8192  # batch-tile cap (lanes); ~1 MiB double-buffered x tile at D_in=16 f32.


def policy_mlp_kernel(x_ref, w1_ref, b1_ref, w2_ref, b2_ref, w3d_ref, b3d_ref, o_ref):
    # x tile arrives in its natural (TB, D_in) layout; cast to bf16 for full-rate MXU issue.
    xb = x_ref[...].astype(jnp.bfloat16)                                   # (TB, D_in)

    # Layer 1: h1[h, b] = sum_d w1[h, d] * x[b, d]  (rhs-transposed contraction on the MXU,
    # f32 accumulate) -> feature-major activations with the batch on the lane axis.
    h1 = lax.dot_general(w1_ref[...], xb, (((1,), (1,)), ((), ())),
                         preferred_element_type=jnp.float32)               # (H, TB)
    h1 = jnp.maximum(h1 + b1_ref[...], 0.0).astype(jnp.bfloat16)

    # Layer 2: Linear + ReLU.
    h2 = jnp.dot(w2_ref[...], h1, preferred_element_type=jnp.float32)      # (H, TB)
    h2 = jnp.maximum(h2 + b2_ref[...], 0.0).astype(jnp.bfloat16)

    # 2-class head: softmax([z0, z1]) == [1 - sigmoid(d), sigmoid(d)], d = z1 - z0.
    d = jnp.dot(w3d_ref[...], h2, preferred_element_type=jnp.float32) + b3d_ref[...]  # (1, TB)
    p1 = 1.0 / (1.0 + jnp.exp(-d))                                         # f32, numerically safe

    # Single lane-dense (2, TB) store.
    o_ref[...] = jnp.concatenate([1.0 - p1, p1], axis=0).astype(o_ref.dtype)


def _choose_block_b(batch: int) -> int:
    """Largest lane-aligned batch tile <= _MAX_BLOCK_B that still leaves >= 2 grid steps
    (so the 'parallel' batch axis can shard across both v7x TensorCores) when possible."""
    b_lanes = pl.cdiv(batch, _LANES) * _LANES
    if b_lanes >= 2 * _LANES:
        blk = min(_MAX_BLOCK_B, b_lanes // 2)
    else:
        blk = b_lanes
    return max(_LANES, (blk // _LANES) * _LANES)


@jax.jit
def policy_network_forward(x, params):
    """Forward pass of PolicyNetwork. x: (B, input_dim) -> (B, 2) action probabilities (f32)."""
    w1, b1, w2, b2, w3, b3 = params
    B, D_in = x.shape
    H = w1.shape[0]

    # One-time tiny weight preprocessing (a few tens of KB): bf16 MXU operands + folded 2-class
    # head.  x itself is passed through untouched — no extra HBM pass on the activation stream.
    w1b = w1.astype(jnp.bfloat16)                         # (H, D_in)
    w2b = w2.astype(jnp.bfloat16)                         # (H, H)
    w3d = (w3[1:2, :] - w3[0:1, :]).astype(jnp.bfloat16)  # (1, H)   logit-difference row
    b1c = b1.reshape(H, 1).astype(jnp.float32)
    b2c = b2.reshape(H, 1).astype(jnp.float32)
    b3d = (b3[1:2] - b3[0:1]).reshape(1, 1).astype(jnp.float32)

    block_b = _choose_block_b(B)
    grid = (pl.cdiv(B, block_b),)
    full = lambda shape: pl.BlockSpec(shape, lambda i: (0,) * len(shape))

    flops = 2 * B * (D_in * H + H * H + H)
    bytes_accessed = (
        x.dtype.itemsize * B * D_in          # x stream (f32 here; bf16 if caller supplies bf16)
        + 4 * 2 * B                          # probabilities out
        + 2 * (D_in * H + H * H + H)         # bf16 weights
        + 4 * (2 * H + 1)                    # f32 biases
    )

    out_t = pl.pallas_call(
        policy_mlp_kernel,
        out_shape=jax.ShapeDtypeStruct((2, B), jnp.float32),
        grid_spec=pl.GridSpec(
            grid=grid,
            in_specs=[
                pl.BlockSpec((block_b, D_in), lambda i: (i, 0)),   # x tile, native layout
                full((H, D_in)),                                   # w1 (VMEM-resident)
                full((H, 1)),                                      # b1
                full((H, H)),                                      # w2
                full((H, 1)),                                      # b2
                full((1, H)),                                      # w3 difference row
                full((1, 1)),                                      # b3 difference
            ],
            out_specs=pl.BlockSpec((2, block_b), lambda i: (0, i)),  # lane-dense output tile
        ),
        compiler_params=pltpu.CompilerParams(
            dimension_semantics=("parallel",),                     # batch axis -> megacore
        ),
        cost_estimate=pl.CostEstimate(
            flops=flops,
            transcendentals=B,
            bytes_accessed=bytes_accessed,
        ),
    )(x, w1b, b1c, w2b, b2c, w3d, b3d)

    return out_t.T                                                 # (B, 2), matches PyTorch layout


def init_params(key, input_dim, hidden_dim=128, n_actions=2):
    """Deterministic init mimicking PyTorch nn.Linear default (uniform +/- 1/sqrt(fan_in)).
    Weights stored in native PyTorch layout (out_features, in_features)."""
    ks = jax.random.split(key, 6)

    def linear_init(kw, kb, fan_in, fan_out):
        bound = 1.0 / jnp.sqrt(jnp.float32(fan_in))
        w = jax.random.uniform(kw, (fan_out, fan_in), jnp.float32, -bound, bound)
        b = jax.random.uniform(kb, (fan_out, 1), jnp.float32, -bound, bound)
        return w, b

    w1, b1 = linear_init(ks[0], ks[1], input_dim, hidden_dim)
    w2, b2 = linear_init(ks[2], ks[3], hidden_dim, hidden_dim)
    w3, b3 = linear_init(ks[4], ks[5], hidden_dim, n_actions)
    return (w1, b1, w2, b2, w3, b3)


def reference_forward(x, params):
    """Pure-JAX f32 reference (PyTorch weight layout) for correctness check."""
    w1, b1, w2, b2, w3, b3 = params
    hp = jax.lax.Precision.HIGHEST
    h1 = jnp.maximum(jnp.dot(x, w1.T, precision=hp) + b1.T, 0.0)
    h2 = jnp.maximum(jnp.dot(h1, w2.T, precision=hp) + b2.T, 0.0)
    logits = jnp.dot(h2, w3.T, precision=hp) + b3.T
    return jax.nn.softmax(logits, axis=-1)


if __name__ == "__main__":
    key = jax.random.PRNGKey(0)
    k_x, k_x2, k_p = jax.random.split(key, 3)

    batch, input_dim, hidden_dim = 8, 16, 128   # hidden_dim matches the PyTorch default
    params = init_params(k_p, input_dim, hidden_dim, n_actions=2)

    # Tolerances are loosened vs. the f32 reference because the MXU path uses bf16 inputs with
    # f32 accumulation (per perf review); probabilities agree to ~1e-3 typically.
    ATOL, RTOL = 2.5e-2, 2e-2

    # Small-shape check (single grid step, partial edge block: 8 rows inside a 128-lane tile).
    x = jax.random.normal(k_x, (batch, input_dim), jnp.float32)
    probs = jax.block_until_ready(policy_network_forward(x, params))
    ref = reference_forward(x, params)
    assert probs.shape == (batch, 2)
    assert jnp.allclose(jnp.sum(probs, axis=-1), 1.0, atol=1e-5)
    assert jnp.allclose(probs, ref, atol=ATOL, rtol=RTOL), float(jnp.max(jnp.abs(probs - ref)))

    # Multi-step 'parallel' grid + non-multiple batch (3 steps of 128 lanes, last one partial).
    x2 = jax.random.normal(k_x2, (300, input_dim), jnp.float32)
    probs2 = jax.block_until_ready(policy_network_forward(x2, params))
    ref2 = reference_forward(x2, params)
    assert probs2.shape == (300, 2)
    assert jnp.allclose(jnp.sum(probs2, axis=-1), 1.0, atol=1e-5)
    assert jnp.allclose(probs2, ref2, atol=ATOL, rtol=RTOL), float(jnp.max(jnp.abs(probs2 - ref2)))

    print("KERNEL_OK")
</pallas_src>

<mosaic_0001>
module attributes {stable_mosaic.version = 11 : i64} {
  func.func @policy_mlp_kernel(%arg0: i32, %arg1: memref<128x16xf32, #tpu.memory_space<vmem>>, %arg2: memref<128x16xbf16, #tpu.memory_space<vmem>>, %arg3: memref<128x1xf32, #tpu.memory_space<vmem>>, %arg4: memref<128x128xbf16, #tpu.memory_space<vmem>>, %arg5: memref<128x1xf32, #tpu.memory_space<vmem>>, %arg6: memref<1x128xbf16, #tpu.memory_space<vmem>>, %arg7: memref<1x1xf32, #tpu.memory_space<vmem>>, %arg8: memref<2x128xf32, #tpu.memory_space<vmem>>) attributes {dimension_semantics = [#tpu.dimension_semantics<parallel>], iteration_bounds = array<i64: 1>, scalar_prefetch = 0 : i64, scratch_operands = 0 : i64, tpu.core_type = #tpu.core_type<tc>, window_params = [{transform_indices = @transform_0, window_bounds = array<i64: 128, 16>}, {pipeline_mode = #tpu.pipeline_mode<synchronous>, transform_indices = @transform_1, window_bounds = array<i64: 128, 16>}, {pipeline_mode = #tpu.pipeline_mode<synchronous>, transform_indices = @transform_2, window_bounds = array<i64: 128, 1>}, {pipeline_mode = #tpu.pipeline_mode<synchronous>, transform_indices = @transform_3, window_bounds = array<i64: 128, 128>}, {pipeline_mode = #tpu.pipeline_mode<synchronous>, transform_indices = @transform_4, window_bounds = array<i64: 128, 1>}, {pipeline_mode = #tpu.pipeline_mode<synchronous>, transform_indices = @transform_5, window_bounds = array<i64: 1, 128>}, {pipeline_mode = #tpu.pipeline_mode<synchronous>, transform_indices = @transform_6, window_bounds = array<i64: 1, 1>}, {transform_indices = @transform_7, window_bounds = array<i64: 2, 128>}]} {
    %c0 = arith.constant 0 : index
    %c0_0 = arith.constant 0 : index
    %0 = vector.load %arg1[%c0, %c0_0] : memref<128x16xf32, #tpu.memory_space<vmem>>, vector<128x16xf32>
    %1 = arith.truncf %0 : vector<128x16xf32> to vector<128x16xbf16>
    %c0_1 = arith.constant 0 : index
    %c0_2 = arith.constant 0 : index
    %2 = vector.load %arg2[%c0_1, %c0_2] : memref<128x16xbf16, #tpu.memory_space<vmem>>, vector<128x16xbf16>
    %cst = arith.constant dense<0.000000e+00> : vector<128x128xf32>
    %3 = tpu.matmul %2, %1, %cst {dimension_numbers = #tpu.dot_dimension_numbers<[1], [1], [0], [0], [0, 0, 1, 0], [], []>} : vector<128x16xbf16>, vector<128x16xbf16>, vector<128x128xf32> -> vector<128x128xf32>
    %c0_3 = arith.constant 0 : index
    %c0_4 = arith.constant 0 : index
    %4 = vector.load %arg3[%c0_3, %c0_4] : memref<128x1xf32, #tpu.memory_space<vmem>>, vector<128x1xf32>
    %5 = vector.broadcast %4 : vector<128x1xf32> to vector<128x128xf32>
    %6 = arith.addf %3, %5 : vector<128x128xf32>
    %cst_5 = arith.constant 0.000000e+00 : f32
    %7 = vector.broadcast %cst_5 : f32 to vector<128x128xf32>
    %8 = arith.maximumf %6, %7 : vector<128x128xf32>
    %9 = arith.truncf %8 : vector<128x128xf32> to vector<128x128xbf16>
    %c0_6 = arith.constant 0 : index
    %c0_7 = arith.constant 0 : index
    %10 = vector.load %arg4[%c0_6, %c0_7] : memref<128x128xbf16, #tpu.memory_space<vmem>>, vector<128x128xbf16>
    %cst_8 = arith.constant dense<0.000000e+00> : vector<128x128xf32>
    %11 = tpu.matmul %10, %9, %cst_8 {dimension_numbers = #tpu.dot_dimension_numbers<[1], [0], [0], [1], [0, 0, 1, 1], [], []>} : vector<128x128xbf16>, vector<128x128xbf16>, vector<128x128xf32> -> vector<128x128xf32>
    %c0_9 = arith.constant 0 : index
    %c0_10 = arith.constant 0 : index
    %12 = vector.load %arg5[%c0_9, %c0_10] : memref<128x1xf32, #tpu.memory_space<vmem>>, vector<128x1xf32>
    %13 = vector.broadcast %12 : vector<128x1xf32> to vector<128x128xf32>
    %14 = arith.addf %11, %13 : vector<128x128xf32>
    %cst_11 = arith.constant 0.000000e+00 : f32
    %15 = vector.broadcast %cst_11 : f32 to vector<128x128xf32>
    %16 = arith.maximumf %14, %15 : vector<128x128xf32>
    %17 = arith.truncf %16 : vector<128x128xf32> to vector<128x128xbf16>
    %c0_12 = arith.constant 0 : index
    %c0_13 = arith.constant 0 : index
    %18 = vector.load %arg6[%c0_12, %c0_13] : memref<1x128xbf16, #tpu.memory_space<vmem>>, vector<1x128xbf16>
    %cst_14 = arith.constant dense<0.000000e+00> : vector<1x128xf32>
    %19 = tpu.matmul %18, %17, %cst_14 {dimension_numbers = #tpu.dot_dimension_numbers<[1], [0], [0], [1], [0, 0, 1, 1], [], []>} : vector<1x128xbf16>, vector<128x128xbf16>, vector<1x128xf32> -> vector<1x128xf32>
    %c0_15 = arith.constant 0 : index
    %c0_16 = arith.constant 0 : index
    %20 = vector.load %arg7[%c0_15, %c0_16] : memref<1x1xf32, #tpu.memory_space<vmem>>, vector<1x1xf32>
    %21 = vector.broadcast %20 : vector<1x1xf32> to vector<1x128xf32>
    %22 = arith.addf %19, %21 : vector<1x128xf32>
    %cst_17 = arith.constant 0.000000e+00 : f32
    %23 = vector.broadcast %cst_17 : f32 to vector<1x128xf32>
    %24 = arith.subf %23, %22 : vector<1x128xf32>
    %25 = math.exp %24 : vector<1x128xf32>
    %cst_18 = arith.constant 1.000000e+00 : f32
    %26 = vector.broadcast %cst_18 : f32 to vector<1x128xf32>
    %27 = arith.addf %26, %25 : vector<1x128xf32>
    %cst_19 = arith.constant 1.000000e+00 : f32
    %28 = vector.broadcast %cst_19 : f32 to vector<1x128xf32>
    %29 = arith.divf %28, %27 : vector<1x128xf32>
    %cst_20 = arith.constant 1.000000e+00 : f32
    %30 = vector.broadcast %cst_20 : f32 to vector<1x128xf32>
    %31 = arith.subf %30, %29 : vector<1x128xf32>
    %32 = tpu.concatenate %31, %29 in 0 : vector<1x128xf32>, vector<1x128xf32> -> vector<2x128xf32>
    %c0_21 = arith.constant 0 : index
    %c0_22 = arith.constant 0 : index
    %33 = vector.load %arg8[%c0_21, %c0_22] : memref<2x128xf32, #tpu.memory_space<vmem>>, vector<2x128xf32>
    tpu.vector_store %arg8[%c0_21, %c0_22], %32 {strides = array<i32>} : memref<2x128xf32, #tpu.memory_space<vmem>>, vector<2x128xf32>,
    return
  }
  func.func @transform_0(%arg0: i32) -> (i32, i32) {
    %c0_i32 = arith.constant 0 : i32
    %c0_i32_0 = arith.constant 0 : i32
    return %arg0, %c0_i32 : i32, i32
  }
  func.func @transform_1(%arg0: i32) -> (i32, i32) {
    %c0_i32 = arith.constant 0 : i32
    %c0_i32_0 = arith.constant 0 : i32
    %c0_i32_1 = arith.constant 0 : i32
    return %c0_i32, %c0_i32_0 : i32, i32
  }
  func.func @transform_2(%arg0: i32) -> (i32, i32) {
    %c0_i32 = arith.constant 0 : i32
    %c0_i32_0 = arith.constant 0 : i32
    %c0_i32_1 = arith.constant 0 : i32
    return %c0_i32, %c0_i32_0 : i32, i32
  }
  func.func @transform_3(%arg0: i32) -> (i32, i32) {
    %c0_i32 = arith.constant 0 : i32
    %c0_i32_0 = arith.constant 0 : i32
    %c0_i32_1 = arith.constant 0 : i32
    return %c0_i32, %c0_i32_0 : i32, i32
  }
  func.func @transform_4(%arg0: i32) -> (i32, i32) {
    %c0_i32 = arith.constant 0 : i32
    %c0_i32_0 = arith.constant 0 : i32
    %c0_i32_1 = arith.constant 0 : i32
    return %c0_i32, %c0_i32_0 : i32, i32
  }
  func.func @transform_5(%arg0: i32) -> (i32, i32) {
    %c0_i32 = arith.constant 0 : i32
    %c0_i32_0 = arith.constant 0 : i32
    %c0_i32_1 = arith.constant 0 : i32
    return %c0_i32, %c0_i32_0 : i32, i32
  }
  func.func @transform_6(%arg0: i32) -> (i32, i32) {
    %c0_i32 = arith.constant 0 : i32
    %c0_i32_0 = arith.constant 0 : i32
    %c0_i32_1 = arith.constant 0 : i32
    return %c0_i32, %c0_i32_0 : i32, i32
  }
  func.func @transform_7(%arg0: i32) -> (i32, i32) {
    %c0_i32 = arith.constant 0 : i32
    %c0_i32_0 = arith.constant 0 : i32
    return %c0_i32, %arg0 : i32, i32
  }
}

</mosaic_0001>

<bundles_post_ra>
// kernel: policy_network_forward.1
= control target key start
LH: loop header
LB: loop body
LE: loop exit
PB: predicated region body
PF: predicated region fallthrough
CT: control target
= control target key end

     0   :  { %s1027_s0 = inlined_call_operand.vmem [shape: f32[8,16], index: 0, kind: input, shape index: {}]   ;;  %s1028_s1 = inlined_call_operand.vmem [shape: bf16[128,16], index: 1, kind: input, shape index: {}]   ;;  %s1029_s2 = inlined_call_operand.vmem [shape: f32[128,1], index: 2, kind: input, shape index: {}]   ;;  %s1030_s3 = inlined_call_operand.vmem [shape: bf16[128,128], index: 3, kind: input, shape index: {}]   ;;  %s1031_s4 = inlined_call_operand.vmem [shape: f32[128,1], index: 4, kind: input, shape index: {}]   ;;  %s1032_s5 = inlined_call_operand.vmem [shape: bf16[1,128], index: 5, kind: input, shape index: {}]   ;;  %s1033_s6 = inlined_call_operand.<no memory space> [shape: f32[1,1], index: 6, kind: input, shape index: {}]   ;;  %s1034_s7 = inlined_call_operand.hbm [shape: f32[2,8], index: 7, kind: output, shape index: {}]  }
   0x1   :  { %v12_v0 = vstv %s1033_s6 }
   0x2   :  { %13 = vst [vmem:[#allocation2] sm:$0x1] %v12_v0 }
   0x3   :  { %v43_v1 = vld [vmem:[%s1027_s0 + $0x70] sm:$0xff]  ;;  %v44_v2 = vld [vmem:[%s1027_s0 + $0x78] sm:$0xff]  ;;  %vm205_vm0 = vcmask 130048   ;;  %v41_v4 = vld [vmem:[%s1027_s0 + $0x60] sm:$0xff] }
   0x4   :  { %v52_v3 = vpack.c.bf16 %v44_v2, %v43_v1  ;;  %v42_v5 = vld [vmem:[%s1027_s0 + $0x68] sm:$0xff] }
   0x6   :  { %v252_v6 = vsel %vm205_vm0, %v52_v3, 0 }
   0x7   :  { %14 = vsyncpa [#allocation4], 0  ;;  %254 = vmatpush.bf16.xpose.msra.mxu0 %v252_v6  ;;  %711 = vmatpush.bf16.xpose.msra.mxu3 %v252_v6  ;;  %v51_v7 = vpack.c.bf16 %v42_v5, %v41_v4  ;;  %v39_v9 = vld [vmem:[%s1027_s0 + $0x50] sm:$0xff]  ;;  %v40_v10 = vld [vmem:[%s1027_s0 + $0x58] sm:$0xff]  ;;  %v762_v14 = vmov 0   ;;  %s614_s8 = sshll.u32 %s1034_s7, 4  ;;  %s615_s8 = int_to_ptr.hbm [resolvable:$true] %s614_s8 }
   0x8   :  { %v83_v11 = vld [vmem:[%s1029_s2 + $0x70] sm:$0xff]  ;;  %v81_v12 = vld [vmem:[%s1029_s2 + $0x60] sm:$0xff]  ;;  %v50_v13 = vpack.c.bf16 %v40_v10, %v39_v9  ;;  %729 = vset.pattern.permute.xlu0 %v762_v14  ;;  %730 = vset.pattern.permute.xlu1 %v762_v14  ;;  %v38_v17 = vld [vmem:[%s1027_s0 + $0x48] sm:$0xff]  ;;  %vm604_vm5 = vcmask 1040384  }
   0x9   :  { %v249_v8 = vsel %vm205_vm0, %v51_v7, 0  ;;  %157 = vperm.xlu0 %729, %v83_v11   ;;  %147 = vperm.xlu1 %730, %v81_v12   ;;  %v37_v16 = vld [vmem:[%s1027_s0 + $0x40] sm:$0xff]  ;;  %v84_v18 = vld [vmem:[%s1029_s2 + $0x78] sm:$0xff]  ;;  %v82_v19 = vld [vmem:[%s1029_s2 + $0x68] sm:$0xff] }
   0xa   :  { %731 = vset.pattern.permute.xlu2 %v762_v14  ;;  %v246_v15 = vsel %vm205_vm0, %v50_v13, 0  ;;  %v49_v20 = vpack.c.bf16 %v38_v17, %v37_v16  ;;  %v35_v22 = vld [vmem:[%s1027_s0 + $0x30] sm:$0xff]  ;;  %v36_v23 = vld [vmem:[%s1027_s0 + $0x38] sm:$0xff]  ;;  %v77_v24 = vld [vmem:[%s1029_s2 + $0x40] sm:$0xff] }
   0xb   :  { %v48_v25 = vpack.c.bf16 %v36_v23, %v35_v22  ;;  %v33_v27 = vld [vmem:[%s1027_s0 + $0x20] sm:$0xff]  ;;  %v34_v28 = vld [vmem:[%s1027_s0 + $0x28] sm:$0xff]  ;;  %v76_v30 = vld [vmem:[%s1029_s2 + $0x38] sm:$0xff] }
   0xc   :  { %v243_v21 = vsel %vm205_vm0, %v49_v20, 0  ;;  %v78_v29 = vld [vmem:[%s1029_s2 + $0x48] sm:$0xff]  ;;  %v79_v31 = vld [vmem:[%s1029_s2 + $0x50] sm:$0xff]  ;;  %v47_v32 = vpack.c.bf16 %v34_v28, %v33_v27  ;;  %v32_v35 = vld [vmem:[%s1027_s0 + $0x18] sm:$0xff] }
   0xd   :  { %v240_v26 = vsel %vm205_vm0, %v48_v25, 0  ;;  %137 = vperm.xlu2 %731, %v79_v31   ;;  %v31_v34 = vld [vmem:[%s1027_s0 + $0x10] sm:$0xff]  ;;  %v73_v36 = vld [vmem:[%s1029_s2 + $0x20] sm:$0xff]  ;;  %v30_v41 = vld [vmem:[%s1027_s0 + $0x8] sm:$0xff] }
   0xe   :  { %v237_v33 = vsel %vm205_vm0, %v47_v32, 0  ;;  %v71_v37 = vld [vmem:[%s1029_s2 + $0x10] sm:$0xff]  ;;  %v46_v38 = vpack.c.bf16 %v32_v35, %v31_v34  ;;  %v29_v40 = vld [vmem:[%s1027_s0] sm:$0xff]  ;;  %v72_v42 = vld [vmem:[%s1029_s2 + $0x18] sm:$0xff] }
   0xf   :  { %255 = vmatpush.bf16.xpose.msra.mxu0 %v249_v8  ;;  %712 = vmatpush.bf16.xpose.msra.mxu3 %v249_v8  ;;  %v80_v43 = vld [vmem:[%s1029_s2 + $0x58] sm:$0xff]  ;;  %v70_v44 = vld [vmem:[%s1029_s2 + $0x8] sm:$0xff]  ;;  %v45_v45 = vpack.c.bf16 %v30_v41, %v29_v40  ;;  %v357_v47 = vld [vmem:[%s1031_s4 + $0x70] sm:$0xff] }
  0x10   :  { %v234_v39 = vsel %vm205_vm0, %v46_v38, 0  ;;  %v75_v48 = vld [vmem:[%s1029_s2 + $0x30] sm:$0xff]  ;;  %v355_v49 = vld [vmem:[%s1031_s4 + $0x60] sm:$0xff]  ;;  %v356_v52 = vld [vmem:[%s1031_s4 + $0x68] sm:$0xff] }
  0x11   :  { %162 = vperm.xlu0 %729, %v84_v18   ;;  %152 = vperm.xlu1 %730, %v82_v19   ;;  %v231_v46 = vsel %vm205_vm0, %v45_v45, 0  ;;  %v695_v50 = vld [vmem:[%s1028_s1] sm:$0xff]  ;;  %v74_v53 = vld [vmem:[%s1029_s2 + $0x28] sm:$0xff]  ;;  %v354_v54 = vld [vmem:[%s1031_s4 + $0x58] sm:$0xff] }
  0x12   :  { %v699_v51 = vld [vmem:[%s1028_s1 + $0x20] sm:$0xff]  ;;  %v349_v57 = vld [vmem:[%s1031_s4 + $0x30] sm:$0xff]  ;;  %v696_v58 = vld [vmem:[%s1028_s1 + $0x8] sm:$0xff] }
  0x13   :  { %v351_v55 = vld [vmem:[%s1031_s4 + $0x40] sm:$0xff]  ;;  %v700_v59 = vld [vmem:[%s1028_s1 + $0x28] sm:$0xff]  ;;  %v350_v60 = vld [vmem:[%s1031_s4 + $0x38] sm:$0xff] }
  0x14   :  { %v69_v56 = vld [vmem:[%s1029_s2] sm:$0xff]  ;;  %v348_v61 = vld [vmem:[%s1031_s4 + $0x28] sm:$0xff]  ;;  %v358_v62 = vld [vmem:[%s1031_s4 + $0x78] sm:$0xff] }
  0x15   :  { %142 = vperm.xlu2 %731, %v80_v43   ;;  %v345_v63 = vld [vmem:[%s1031_s4 + $0x10] sm:$0xff]  ;;  %v343_v1 = vld [vmem:[%s1031_s4] sm:$0xff]  ;;  %v344_v4 = vld [vmem:[%s1031_s4 + $0x8] sm:$0xff] }
  0x16   :  { %v353_v0 = vld [vmem:[%s1031_s4 + $0x50] sm:$0xff]  ;;  %v352_v5 = vld [vmem:[%s1031_s4 + $0x48] sm:$0xff]  ;;  %v347_v6 = vld [vmem:[%s1031_s4 + $0x20] sm:$0xff] }
  0x17   :  { %256 = vmatpush.bf16.xpose.msra.mxu0 %v246_v15  ;;  %713 = vmatpush.bf16.xpose.msra.mxu3 %v246_v15  ;;  %v697_v2 = vld [vmem:[%s1028_s1 + $0x10] sm:$0xff]  ;;  %v698_v7 = vld [vmem:[%s1028_s1 + $0x18] sm:$0xff]  ;;  %v561_v10 = vld [vmem:[#allocation2] sm:$0x1] }
  0x18   :  { %v701_v3 = vld [vmem:[%s1028_s1 + $0x30] sm:$0xff]  ;;  %v702_v8 = vld [vmem:[%s1028_s1 + $0x38] sm:$0xff] }
  0x19   :  { %127 = vperm.xlu0 %729, %v77_v24   ;;  %132 = vperm.xlu1 %730, %v78_v29   ;;  %v346_v9 = vld [vmem:[%s1031_s4 + $0x18] sm:$0xff] }
  0x1d   :  { %117 = vperm.xlu2 %731, %v75_v48  }
  0x1f   :  { %257 = vmatpush.bf16.xpose.msra.mxu0 %v243_v21  ;;  %714 = vmatpush.bf16.xpose.msra.mxu3 %v243_v21 }
  0x21   :  { %122 = vperm.xlu0 %729, %v76_v30   ;;  %107 = vperm.xlu1 %730, %v73_v36  }
  0x25   :  { %112 = vperm.xlu2 %731, %v74_v53  }
  0x27   :  { %258 = vmatpush.bf16.xpose.msra.mxu0 %v240_v26  ;;  %715 = vmatpush.bf16.xpose.msra.mxu3 %v240_v26 }
  0x29   :  { %97 = vperm.xlu0 %729, %v71_v37   ;;  %102 = vperm.xlu1 %730, %v72_v42  }
  0x2d   :  { %87 = vperm.xlu2 %731, %v69_v56  }
  0x2f   :  { %259 = vmatpush.bf16.xpose.msra.mxu0 %v237_v33  ;;  %716 = vmatpush.bf16.xpose.msra.mxu3 %v237_v33 }
  0x31   :  { %92 = vperm.xlu0 %729, %v70_v44   ;;  %431 = vperm.xlu1 %730, %v357_v47  }
  0x35   :  { %436 = vperm.xlu2 %731, %v358_v62  }
  0x37   :  { %260 = vmatpush.bf16.xpose.msra.mxu0 %v234_v39  ;;  %717 = vmatpush.bf16.xpose.msra.mxu3 %v234_v39 }
  0x39   :  { %421 = vperm.xlu0 %729, %v355_v49   ;;  %426 = vperm.xlu1 %730, %v356_v52  }
  0x3d   :  { %411 = vperm.xlu2 %731, %v353_v0  }
  0x3f   :  { %261 = vmatpush.bf16.xpose.msra.mxu0 %v231_v46  ;;  %718 = vmatpush.bf16.xpose.msra.mxu3 %v231_v46 }
  0x41   :  { %416 = vperm.xlu0 %729, %v354_v54   ;;  %401 = vperm.xlu1 %730, %v351_v55  }
  0x45   :  { %406 = vperm.xlu2 %731, %v352_v5  }
  0x46   :  { %655 = vmatmul.msk.bf16.vlgmr.msra.gmra.mxu0 %vm205_vm0, %v695_v50  ;;  %659 = vmatmul.msk.bf16.vlgmr.msra.gmra.mxu3 %vm205_vm0, %v699_v51 }
  0x49   :  { %391 = vperm.xlu0 %729, %v349_v57   ;;  %396 = vperm.xlu1 %730, %v350_v60  }
  0x4d   :  { %381 = vperm.xlu2 %731, %v347_v6  }
  0x51   :  { %386 = vperm.xlu0 %729, %v348_v61   ;;  %371 = vperm.xlu1 %730, %v345_v63  }
  0x55   :  { %376 = vperm.xlu2 %731, %v346_v9  }
  0x56   :  { %656 = vmatmul.msk.bf16.gmra.mxu0 %vm205_vm0, %v696_v58  ;;  %660 = vmatmul.msk.bf16.gmra.mxu3 %vm205_vm0, %v700_v59 }
  0x59   :  { %361 = vperm.xlu0 %729, %v343_v1   ;;  %366 = vperm.xlu1 %730, %v344_v4  }
  0x5d   :  { %564 = vperm.xlu2 %731, %v561_v10  }
  0x66   :  { %657 = vmatmul.msk.bf16.gmra.mxu0 %vm205_vm0, %v697_v2  ;;  %661 = vmatmul.msk.bf16.gmra.mxu3 %vm205_vm0, %v701_v3 }
  0x67   :  { %v138_v23 = vpop.permute.xlu2 %137 }
  0x6f   :  { %v143_v29 = vpop.permute.xlu2 %142 }
  0x76   :  { %658 = vmatmul.msk.bf16.gmra.mxu0 %vm205_vm0, %v698_v7  ;;  %662 = vmatmul.msk.bf16.gmra.mxu3 %vm205_vm0, %v702_v8 }
  0x77   :  { %v118_v37 = vpop.permute.xlu2 %117 }
  0x7b   :  { %v158_v19 = vpop.permute.xlu0 %157  ;;  %v148_v21 = vpop.permute.xlu1 %147 }
  0x7f   :  { %v113_v55 = vpop.permute.xlu2 %112 }
  0x83   :  { %v163_v24 = vpop.permute.xlu0 %162  ;;  %v153_v26 = vpop.permute.xlu1 %152 }
  0x87   :  { %v88_v8 = vpop.permute.xlu2 %87 }
  0x8b   :  { %v128_v30 = vpop.permute.xlu0 %127  ;;  %v133_v31 = vpop.permute.xlu1 %132 }
  0x93   :  { %v123_v41 = vpop.permute.xlu0 %122  ;;  %v108_v50 = vpop.permute.xlu1 %107 }
  0x9b   :  { %v98_v59 = vpop.permute.xlu0 %97  ;;  %v103_v2 = vpop.permute.xlu1 %102 }
  0xa3   :  { %v93_v9 = vpop.permute.xlu0 %92 }
  0xc3   :  { %v991_v11 = vpop.f32.mrf.mxu0 }
  0xc4   :  { %v264_v10 = vadd.f32 %v991_v11, %v88_v8  ;;  %v709_v11 = vld [vmem:[%s1030_s3 + $0x30] sm:$0xff] }
  0xc9   :  { %v283_v12 = vpop.f32.mrf.mxu3 }
  0xca   :  { %v284_v51 = vadd.f32 %v283_v12, %v128_v30 }
  0xcb   :  { %v993_v13 = vpop.f32.mrf.mxu0 }
  0xcc   :  { %v311_v60 = vmax.f32 %v284_v51, 0.0  ;;  %v266_v12 = vadd.f32 %v993_v13, %v93_v9  ;;  %v704_v13 = vld [vmem:[%s1030_s3 + $0x8] sm:$0xff] }
  0xd1   :  { %v285_v14 = vpop.f32.mrf.mxu3 }
  0xd2   :  { %v286_v47 = vadd.f32 %v285_v14, %v133_v31 }
  0xd3   :  { %v268_v15 = vpop.f32.mrf.mxu0 }
  0xd4   :  { %v312_v54 = vmax.f32 %v286_v47, 0.0  ;;  %v269_v3 = vadd.f32 %v268_v15, %v98_v59 }
  0xd6   :  { %v323_v61 = vpack.c.bf16 %v312_v54, %v311_v60  ;;  %v305_v14 = vmax.f32 %v269_v3, 0.0 }
  0xd9   :  { %v288_v16 = vpop.f32.mrf.mxu3 }
  0xda   :  { %v289_v45 = vadd.f32 %v288_v16, %v138_v23  ;;  %v705_v23 = vld [vmem:[%s1030_s3 + $0x10] sm:$0xff] }
  0xdb   :  { %v270_v18 = vpop.f32.mrf.mxu0 }
  0xdc   :  { %v313_v53 = vmax.f32 %v289_v45, 0.0  ;;  %v271_v4 = vadd.f32 %v270_v18, %v103_v2 }
  0xde   :  { %v306_v16 = vmax.f32 %v271_v4, 0.0 }
  0xe0   :  { %v320_v15 = vpack.c.bf16 %v306_v16, %v305_v14 }
  0xe1   :  { %v290_v17 = vpop.f32.mrf.mxu3 }
  0xe2   :  { %v291_v42 = vadd.f32 %v290_v17, %v143_v29 }
  0xe3   :  { %v273_v22 = vpop.f32.mrf.mxu0 }
  0xe4   :  { %v314_v48 = vmax.f32 %v291_v42, 0.0  ;;  %v274_v62 = vadd.f32 %v273_v22, %v108_v50  ;;  %v710_v22 = vld [vmem:[%s1030_s3 + $0x38] sm:$0xff] }
  0xe6   :  { %v324_v58 = vpack.c.bf16 %v314_v48, %v313_v53  ;;  %v307_v5 = vmax.f32 %v274_v62, 0.0 }
  0xe9   :  { %v293_v20 = vpop.f32.mrf.mxu3 }
  0xea   :  { %v294_v38 = vadd.f32 %v293_v20, %v148_v21  ;;  %v303_v20 = vmax.f32 %v264_v10, 0.0  ;;  %v703_v21 = vld [vmem:[%s1030_s3] sm:$0xff] }
  0xeb   :  { %v275_v27 = vpop.f32.mrf.mxu0 }
  0xec   :  { %v315_v46 = vmax.f32 %v294_v38, 0.0  ;;  %v276_v63 = vadd.f32 %v275_v27, %v113_v55  ;;  %v432_v27 = vpop.permute.xlu1 %431 }
  0xee   :  { %v308_v6 = vmax.f32 %v276_v63, 0.0 }
  0xf0   :  { %v321_v17 = vpack.c.bf16 %v308_v6, %v307_v5 }
  0xf1   :  { %v295_v25 = vpop.f32.mrf.mxu3 }
  0xf2   :  { %v296_v35 = vadd.f32 %v295_v25, %v153_v26  ;;  %v707_v25 = vld [vmem:[%s1030_s3 + $0x20] sm:$0xff]  ;;  %v708_v26 = vld [vmem:[%s1030_s3 + $0x28] sm:$0xff] }
  0xf3   :  { %v278_v33 = vpop.f32.mrf.mxu0 }
  0xf4   :  { %v316_v43 = vmax.f32 %v296_v35, 0.0  ;;  %v279_v56 = vadd.f32 %v278_v33, %v118_v37  ;;  %v427_v29 = vpop.permute.xlu1 %426 }
  0xf6   :  { %v325_v49 = vpack.c.bf16 %v316_v43, %v315_v46  ;;  %v309_v0 = vmax.f32 %v279_v56, 0.0 }
  0xf9   :  { %v298_v28 = vpop.f32.mrf.mxu3 }
  0xfa   :  { %v299_v32 = vadd.f32 %v298_v28, %v158_v19  ;;  %v304_v19 = vmax.f32 %v266_v12, 0.0  ;;  %v422_v28 = vpop.permute.xlu0 %421 }
  0xfb   :  { %v280_v52 = vpop.f32.mrf.mxu0 }
  0xfc   :  { %v317_v39 = vmax.f32 %v299_v32, 0.0  ;;  %v281_v57 = vadd.f32 %v280_v52, %v123_v41  ;;  %v319_v18 = vpack.c.bf16 %v304_v19, %v303_v20  ;;  %v402_v31 = vpop.permute.xlu1 %401  ;;  %v437_v32 = vpop.permute.xlu2 %436 }
  0xfe   :  { %v310_v1 = vmax.f32 %v281_v57, 0.0 }
 0x100   :  { %v322_v7 = vpack.c.bf16 %v310_v1, %v309_v0 }
 0x101   :  { %v300_v34 = vpop.f32.mrf.mxu3 }
 0x102   :  { %v301_v36 = vadd.f32 %v300_v34, %v163_v24  ;;  %v706_v24 = vld [vmem:[%s1030_s3 + $0x18] sm:$0xff]  ;;  %v417_v30 = vpop.permute.xlu0 %416 }
 0x104   :  { %v318_v40 = vmax.f32 %v301_v36, 0.0  ;;  %v397_v34 = vpop.permute.xlu1 %396  ;;  %v412_v35 = vpop.permute.xlu2 %411 }
 0x106   :  { %v326_v44 = vpack.c.bf16 %v318_v40, %v317_v39 }
 0x108   :  { %487 = vmatpush.bf16.msra.mxu1 %v326_v44  ;;  %719 = vmatpush.bf16.msra.mxu2 %v326_v44 }
 0x10a   :  { %v392_v33 = vpop.permute.xlu0 %391 }
 0x10c   :  { %488 = vmatpush.bf16.msra.mxu1 %v325_v49  ;;  %720 = vmatpush.bf16.msra.mxu2 %v325_v49  ;;  %v372_v37 = vpop.permute.xlu1 %371  ;;  %v407_v39 = vpop.permute.xlu2 %406 }
 0x110   :  { %489 = vmatpush.bf16.msra.mxu1 %v324_v58  ;;  %721 = vmatpush.bf16.msra.mxu2 %v324_v58 }
 0x112   :  { %v387_v36 = vpop.permute.xlu0 %386 }
 0x114   :  { %490 = vmatpush.bf16.msra.mxu1 %v323_v61  ;;  %722 = vmatpush.bf16.msra.mxu2 %v323_v61  ;;  %v367_v43 = vpop.permute.xlu1 %366  ;;  %v382_v49 = vpop.permute.xlu2 %381 }
 0x118   :  { %491 = vmatpush.bf16.msra.mxu1 %v322_v7  ;;  %723 = vmatpush.bf16.msra.mxu2 %v322_v7 }
 0x11a   :  { %v362_v40 = vpop.permute.xlu0 %361 }
 0x11c   :  { %492 = vmatpush.bf16.msra.mxu1 %v321_v17  ;;  %724 = vmatpush.bf16.msra.mxu2 %v321_v17  ;;  %v377_v54 = vpop.permute.xlu2 %376 }
 0x120   :  { %493 = vmatpush.bf16.msra.mxu1 %v320_v15  ;;  %725 = vmatpush.bf16.msra.mxu2 %v320_v15 }
 0x124   :  { %494 = vmatpush.bf16.msra.mxu1 %v319_v18  ;;  %726 = vmatpush.bf16.msra.mxu2 %v319_v18 }
 0x127   :  { %495 = vmatmul.bf16.vlgmr.msra.gmra.mxu1 %v703_v21  ;;  %525 = vmatmul.bf16.vlgmr.msra.gmra.mxu2 %v709_v11 }
 0x137   :  { %500 = vmatmul.bf16.gmra.mxu1 %v704_v13  ;;  %530 = vmatmul.bf16.gmra.mxu2 %v710_v22 }
 0x147   :  { %505 = vmatmul.bf16.gmra.mxu1 %v705_v23 }
 0x157   :  { %510 = vmatmul.bf16.gmra.mxu1 %v706_v24 }
 0x167   :  { %515 = vmatmul.bf16.gmra.mxu1 %v707_v25 }
 0x177   :  { %520 = vmatmul.bf16.gmra.mxu1 %v708_v26 }
 0x1a4   :  { %v496_v38 = vpop.f32.mrf.mxu1 }
 0x1a5   :  { %v497_v42 = vadd.f32 %v496_v38, %v362_v40 }
 0x1a7   :  { %v536_v46 = vmax.f32 %v497_v42, 0.0 }
 0x1aa   :  { %v526_v41 = vpop.f32.mrf.mxu2 }
 0x1ab   :  { %v527_v1 = vadd.f32 %v526_v41, %v422_v28 }
 0x1ac   :  { %v498_v44 = vpop.f32.mrf.mxu1 }
 0x1ad   :  { %v499_v45 = vadd.f32 %v498_v44, %v367_v43  ;;  %v548_v6 = vmax.f32 %v527_v1, 0.0 }
 0x1af   :  { %v537_v47 = vmax.f32 %v499_v45, 0.0 }
 0x1b1   :  { %v552_v48 = vpack.c.bf16 %v537_v47, %v536_v46 }
 0x1b2   :  { %v528_v50 = vpop.f32.mrf.mxu2 }
 0x1b3   :  { %v529_v62 = vadd.f32 %v528_v50, %v427_v29 }
 0x1b4   :  { %v501_v51 = vpop.f32.mrf.mxu1 }
 0x1b5   :  { %v502_v53 = vadd.f32 %v501_v51, %v372_v37  ;;  %v549_v4 = vmax.f32 %v529_v62, 0.0 }
 0x1b7   :  { %v538_v57 = vmax.f32 %v502_v53, 0.0  ;;  %v558_v7 = vpack.c.bf16 %v549_v4, %v548_v6 }
 0x1ba   :  { %v531_v52 = vpop.f32.mrf.mxu2 }
 0x1bb   :  { %v532_v59 = vadd.f32 %v531_v52, %v432_v27 }
 0x1bc   :  { %v503_v55 = vpop.f32.mrf.mxu1 }
 0x1bd   :  { %v504_v56 = vadd.f32 %v503_v55, %v377_v54  ;;  %v550_v2 = vmax.f32 %v532_v59, 0.0 }
 0x1bf   :  { %v539_v58 = vmax.f32 %v504_v56, 0.0 }
 0x1c1   :  { %v553_v60 = vpack.c.bf16 %v539_v58, %v538_v57 }
 0x1c2   :  { %v533_v61 = vpop.f32.mrf.mxu2 }
 0x1c3   :  { %v534_v63 = vadd.f32 %v533_v61, %v437_v32 }
 0x1c4   :  { %v506_v0 = vpop.f32.mrf.mxu1 }
 0x1c5   :  { %v551_v3 = vmax.f32 %v534_v63, 0.0  ;;  %v507_v29 = vadd.f32 %v506_v0, %v382_v49 }
 0x1c7   :  { %v559_v5 = vpack.c.bf16 %v551_v3, %v550_v2  ;;  %v540_v38 = vmax.f32 %v507_v29, 0.0 }
 0x1c9   :  { %568 = vmatpush.bf16.msrb.mxu2 %v559_v5 }
 0x1cc   :  { %v508_v8 = vpop.f32.mrf.mxu1 }
 0x1cd   :  { %569 = vmatpush.bf16.msrb.mxu2 %v558_v7  ;;  %v509_v26 = vadd.f32 %v508_v8, %v387_v36 }
 0x1cf   :  { %v541_v37 = vmax.f32 %v509_v26, 0.0 }
 0x1d4   :  { %v511_v9 = vpop.f32.mrf.mxu1 }
 0x1d5   :  { %v512_v24 = vadd.f32 %v511_v9, %v392_v33  ;;  %v565_v33 = vpop.permute.xlu2 %564 }
 0x1d7   :  { %v542_v32 = vmax.f32 %v512_v24, 0.0 }
 0x1dc   :  { %v513_v10 = vpop.f32.mrf.mxu1 }
 0x1dd   :  { %v514_v13 = vadd.f32 %v513_v10, %v397_v34  ;;  %v567_v34 = vperm.slane %v565_v33, 0 }
 0x1df   :  { %v543_v27 = vmax.f32 %v514_v13, 0.0 }
 0x1e4   :  { %v516_v12 = vpop.f32.mrf.mxu1 }
 0x1e5   :  { %v517_v18 = vadd.f32 %v516_v12, %v402_v31  ;;  %v560_v31 = vld [vmem:[%s1032_s5] sm:$0x1]  ;;  %s763_s5 = smov [#allocation3]  }
 0x1e6   :  { %s612_s28 = sshll.u32 %s763_s5, 4  ;;  %s613_s28 = int_to_ptr.vmem [resolvable:$true] %s612_s28 }
 0x1e7   :  { %v544_v25 = vmax.f32 %v517_v18, 0.0 }
 0x1ec   :  { %v518_v14 = vpop.f32.mrf.mxu1 }
 0x1ed   :  { %v519_v20 = vadd.f32 %v518_v14, %v407_v39 }
 0x1ef   :  { %v545_v22 = vmax.f32 %v519_v20, 0.0 }
 0x1f1   :  { %v556_v28 = vpack.c.bf16 %v545_v22, %v544_v25 }
 0x1f4   :  { %v521_v16 = vpop.f32.mrf.mxu1 }
 0x1f5   :  { %v522_v17 = vadd.f32 %v521_v16, %v412_v35  ;;  %v555_v35 = vpack.c.bf16 %v543_v27, %v542_v32 }
 0x1f7   :  { %v546_v21 = vmax.f32 %v522_v17, 0.0 }
 0x1fc   :  { %v523_v19 = vpop.f32.mrf.mxu1 }
 0x1fd   :  { %v524_v15 = vadd.f32 %v523_v19, %v417_v30  ;;  %v554_v30 = vpack.c.bf16 %v541_v37, %v540_v38 }
 0x1ff   :  { %v547_v11 = vmax.f32 %v524_v15, 0.0 }
 0x201   :  { %v557_v23 = vpack.c.bf16 %v547_v11, %v546_v21 }
 0x203   :  { %570 = vmatpush.bf16.msrb.mxu2 %v557_v23 }
 0x207   :  { %571 = vmatpush.bf16.msrb.mxu2 %v556_v28 }
 0x20b   :  { %572 = vmatpush.bf16.msrb.mxu2 %v555_v35 }
 0x20f   :  { %573 = vmatpush.bf16.msrb.mxu2 %v554_v30 }
 0x213   :  { %574 = vmatpush.bf16.msrb.mxu2 %v553_v60 }
 0x217   :  { %575 = vmatpush.bf16.msrb.mxu2 %v552_v48 }
 0x21a   :  { %576 = vmatmul.bf16.vlgmr.msrb.gmra.mxu2 %v560_v31 }
 0x29d   :  { %v577_v36 = vpop.f32.mrf.mxu2 }
 0x29e   :  { %v578_v39 = vadd.f32 %v577_v36, %v567_v34 }
 0x2a0   :  { %v581_v40 = vsub.f32 0.0, %v578_v39 }
 0x2a2   :  { %v582_v41 = vmul.f32 1.442695, %v581_v40 }
 0x2a4   :  { %732 = vpow2.f32 %v582_v41 }
 0x2a5   :  { %v579_v42 = vpop.f32.mrf.mxu2 }
 0x2aa   :  { %v733_v43 = vpop.eup %732 }
 0x2ab   :  { %v584_v44 = vadd.f32 1.0, %v733_v43 }
 0x2ad   :  { %734 = vrcp.f32 %v584_v44  ;;  %v596_v48 = vand.u32 2147483648, %v584_v44  ;;  %v594_v50 = vand.u32 2147483647, %v584_v44  ;;  %vm590_vm2 = vweird.f32 %v584_v44 }
 0x2af   :  { %v597_v52 = vor.u32 1.1754944e-38, %v596_v48  ;;  %vm595_vm4 = vcmp.eq.f32.partialorder %v594_v50, 8.507059e+37 }
 0x2b3   :  { %v735_v45 = vpop.eup %734 }
 0x2b4   :  { %v586_v46 = vmul.f32 %v735_v45, %v584_v44  ;;  %vm591_vm1 = vweird.f32 %v735_v45 }
 0x2b5   :  { %vm592_vm3 = vmor %vm590_vm2, %vm591_vm1 }
 0x2b6   :  { %v587_v47 = vsub.f32 1.0, %v586_v46 }
 0x2b8   :  { %v588_v49 = vmul.f32 %v735_v45, %v587_v47 }
 0x2ba   :  { %v589_v51 = vadd.f32 %v735_v45, %v588_v49 }
 0x2bc   :  { %v593_v53 = vsel %vm592_vm3, %v735_v45, %v589_v51 }
 0x2bd   :  { %v598_v54 = vsel %vm595_vm4, %v597_v52, %v593_v53 }
 0x2be   :  { %v600_v55 = vsub.f32 1.0, %v598_v54  ;;  %v602_v56 = vrot.slane %v598_v54, 7 }
 0x2c0   :  { %v605_v57 = vsel %vm604_vm5, %v600_v55, %v602_v56 }
 0x2c1   :  { %606 = vst [vmem:[#allocation3] sm:$0x3] %v605_v57 }
 0x2c2   :  { %617 = dma.vmem_to_hbm [thread:$0]  %s613_s28, 32, %s615_s8, [#allocation4]  }
 0x2c3   :  { %760 = dma.done.wait [#allocation4], 32  }
 0x2c4   :  { %761 = vsyncadd [#allocation4], 4294967264 }
 0x2c5   :  { %622 = vsyncpa [#allocation4], 1 }

</bundles_post_ra>
